<compile_context>
chip_gen: v6e
topology: v6e:2x2x1
jax: 0.10.0
libtpu: 0.0.40
codegen_flags: <defaults>
</compile_context>

<pallas_src>
import functools

import jax
import jax.numpy as jnp
import numpy as np
from jax import lax
from jax.experimental import pallas as pl
from jax.experimental.pallas import tpu as pltpu

_LANES = 128


def _smooth_l1(d):
    # PyTorch SmoothL1Loss, default beta = 1.0
    ad = jnp.abs(d)
    return jnp.where(ad < 1.0, 0.5 * d * d, ad - 0.5)


def _per_elem_loss(d, loss_type):
    return d * d if loss_type == 1 else _smooth_l1(d)


def _round_up(x, m):
    return ((x + m - 1) // m) * m


def _make_kernel(loss_type, tiles_per_chunk, eff_tile_rows, rows, needs_mask, acc_sub):
    """Streaming per-element-loss sum into a vreg-shaped output accumulator."""

    def kernel(p_ref, t_ref, o_ref):
        # The output block is VMEM-resident across the 'arbitrary' (t) axis since its
        # index_map ignores t: init once per chunk, accumulate directly into it.
        @pl.when(pl.program_id(1) == 0)
        def _():
            o_ref[...] = jnp.zeros_like(o_ref)

        d = p_ref[...].astype(jnp.float32) - t_ref[...].astype(jnp.float32)
        per_elem = _per_elem_loss(d, loss_type)

        if needs_mask:
            # Mask rows past the logical end (partial last block and/or phantom grid
            # steps created by the unconditional 2-way chunk split).  Pure VPU work,
            # only emitted when the tiling is ragged.
            tile_id = pl.program_id(0) * tiles_per_chunk + pl.program_id(1)
            row0 = tile_id * eff_tile_rows
            local = lax.broadcasted_iota(jnp.int32, (eff_tile_rows, _LANES), 0)
            per_elem = jnp.where(row0 + local < rows, per_elem, 0.0)

        if acc_sub == 8:
            # Fold the tile's rows onto an (8,128) accumulator: VPU adds only; the
            # cross-lane reduce + 1/(B*T) scale happen once, in the wrapper.
            o_ref[...] += jnp.sum(per_elem.reshape(-1, 8, _LANES), axis=0)
        else:
            o_ref[...] += jnp.sum(per_elem, axis=0, keepdims=True)

    return kernel


def highdemension_loss(preds, target, *, loss_type: int = 0, tile_rows: int = 4096):
    """Pallas implementation of HighdemensionLoss.forward.

    preds, target: (B, T, output_size).  Returns a float32 scalar.
    """
    assert preds.shape == target.shape
    B, T, O = preds.shape
    M = B * T            # each per-channel mean divides by B*T
    N = M * O            # total element count

    flat_p = preds.reshape(-1)      # free reshape (contiguous), no copy
    flat_t = target.reshape(-1)

    rows = N // _LANES              # 128-aligned bulk handled by the kernel
    bulk = rows * _LANES
    tail = N - bulk                 # < 128 leftover elements, handled in plain JAX

    # dtype-aware tile cap: same byte footprint per block regardless of input dtype
    # (bf16 gets 2x the rows of f32).  Multiple of 16 so bf16 sublane packing is legal.
    itemsize = np.dtype(preds.dtype).itemsize
    scale = max(1, 4 // itemsize)
    tile_cap = max(16, _round_up(tile_rows * scale, 16))

    kernel_sum = jnp.float32(0.0)
    if rows > 0:
        if bulk == N:
            p2 = flat_p.reshape(rows, _LANES)         # zero-copy lane-dense view
            t2 = flat_t.reshape(rows, _LANES)
        else:
            p2 = flat_p[:bulk].reshape(rows, _LANES)  # ragged: kernel gets the bulk
            t2 = flat_t[:bulk].reshape(rows, _LANES)

        eff_tile_rows = rows if rows <= tile_cap else tile_cap
        total_blocks = pl.cdiv(rows, eff_tile_rows)
        # Always split across 2 chunks when there are >=2 blocks (v7x: one per TC).
        num_chunks = 2 if total_blocks >= 2 else 1
        tiles_per_chunk = pl.cdiv(total_blocks, num_chunks)

        has_phantom = num_chunks * tiles_per_chunk > total_blocks
        partial_last = (rows % eff_tile_rows) != 0
        needs_mask = has_phantom or partial_last
        acc_sub = 8 if eff_tile_rows % 8 == 0 else 1

        if has_phantom:
            # Clamp phantom steps onto the last real block (keeps the DMA in-bounds);
            # their contribution is zeroed by the in-kernel row mask.
            in_map = lambda c, t: (
                jnp.minimum(c * tiles_per_chunk + t, total_blocks - 1), 0)
        else:
            in_map = lambda c, t: (c * tiles_per_chunk + t, 0)

        kernel = _make_kernel(loss_type, tiles_per_chunk, eff_tile_rows, rows,
                              needs_mask, acc_sub)

        partials = pl.pallas_call(
            kernel,
            out_shape=jax.ShapeDtypeStruct((num_chunks * acc_sub, _LANES), jnp.float32),
            grid_spec=pltpu.PrefetchScalarGridSpec(
                num_scalar_prefetch=0,
                grid=(num_chunks, tiles_per_chunk),
                in_specs=[
                    pl.BlockSpec((eff_tile_rows, _LANES), in_map),
                    pl.BlockSpec((eff_tile_rows, _LANES), in_map),
                ],
                out_specs=pl.BlockSpec((acc_sub, _LANES), lambda c, t: (c, 0)),
            ),
            compiler_params=pltpu.CompilerParams(
                dimension_semantics=("parallel", "arbitrary"),
                # 2 inputs x 2 pipeline buffers x <=2 MiB blocks ~ 8 MiB; 32 MiB gives
                # headroom on v5e (16 MiB scoped default) and stays under v7x's 64 MiB.
                vmem_limit_bytes=32 * 1024 * 1024,
            ),
        )(p2, t2)
        kernel_sum = jnp.sum(partials)

    if tail:
        # Tiny (<128 element) ragged tail: plain JAX, negligible cost, no padded copy.
        dtail = flat_p[bulk:].astype(jnp.float32) - flat_t[bulk:].astype(jnp.float32)
        kernel_sum = kernel_sum + jnp.sum(_per_elem_loss(dtail, loss_type))

    # sum_i mean_i == (1/(B*T)) * total sum
    return kernel_sum * (1.0 / float(M))


def _reference(preds, target, loss_type):
    """Plain-JAX reference matching the PyTorch module semantics."""
    p = preds.astype(jnp.float32)
    t = target.astype(jnp.float32)
    O = p.shape[-1]
    losses = []
    for i in range(O):
        d = p[:, :, i] - t[:, :, i]
        losses.append(jnp.mean(d * d) if loss_type == 1 else jnp.mean(_smooth_l1(d)))
    return jnp.sum(jnp.stack(losses))


if __name__ == "__main__":
    ok = True
    key = jax.random.PRNGKey(0)

    # 1) Base case: (batch=2, seq=8, output_size=16), f32, both loss types.
    kp, kt = jax.random.split(key)
    preds = jax.random.normal(kp, (2, 8, 16), dtype=jnp.float32) * 2.0
    target = jax.random.normal(kt, (2, 8, 16), dtype=jnp.float32) * 2.0
    for loss_type in (0, 1):  # 0 = SmoothL1, 1 = MSE
        fn = jax.jit(functools.partial(highdemension_loss, loss_type=loss_type))
        got = jax.block_until_ready(fn(preds, target))
        want = jax.block_until_ready(_reference(preds, target, loss_type))
        if not np.allclose(np.asarray(got), np.asarray(want), rtol=1e-5, atol=1e-5):
            ok = False
            print(f"MISMATCH loss_type={loss_type}: got {got}, want {want}")

    # 2) Multi-block case with a small forced tile: exercises the 2-chunk split and
    #    the partial-last-block mask path.
    kp2, kt2 = jax.random.split(jax.random.PRNGKey(1))
    p2 = jax.random.normal(kp2, (4, 18, 32), dtype=jnp.float32)
    t2 = jax.random.normal(kt2, (4, 18, 32), dtype=jnp.float32)
    fn2 = jax.jit(functools.partial(highdemension_loss, loss_type=0, tile_rows=8))
    got = jax.block_until_ready(fn2(p2, t2))
    want = jax.block_until_ready(_reference(p2, t2, 0))
    if not np.allclose(np.asarray(got), np.asarray(want), rtol=1e-5, atol=1e-5):
        ok = False
        print(f"MISMATCH multi-block: got {got}, want {want}")

    # 3) bf16 + ragged size (N not a multiple of 128): exercises the in-kernel cast
    #    and the plain-JAX tail path (no padded copy anywhere).
    kp3, kt3 = jax.random.split(jax.random.PRNGKey(2))
    p_bf = (jax.random.normal(kp3, (3, 7, 13), dtype=jnp.float32) * 2.0).astype(jnp.bfloat16)
    t_bf = (jax.random.normal(kt3, (3, 7, 13), dtype=jnp.float32) * 2.0).astype(jnp.bfloat16)
    got = jax.block_until_ready(
        jax.jit(functools.partial(highdemension_loss, loss_type=0))(p_bf, t_bf))
    want = jax.block_until_ready(_reference(p_bf, t_bf, 0))
    if not np.allclose(np.asarray(got), np.asarray(want), rtol=2e-2, atol=2e-2):
        ok = False
        print(f"MISMATCH bf16/ragged: got {got}, want {want}")

    if ok:
        print("KERNEL_OK")
</pallas_src>

<mosaic_0001>
module attributes {stable_mosaic.version = 11 : i64} {
  func.func @kernel(%arg0: i32, %arg1: i32, %arg2: memref<2x128xf32, #tpu.memory_space<vmem>>, %arg3: memref<2x128xf32, #tpu.memory_space<vmem>>, %arg4: memref<1x128xf32, #tpu.memory_space<vmem>>) attributes {dimension_semantics = [#tpu.dimension_semantics<parallel>, #tpu.dimension_semantics<arbitrary>], iteration_bounds = array<i64: 1, 1>, scalar_prefetch = 0 : i64, scratch_operands = 0 : i64, tpu.core_type = #tpu.core_type<tc>, window_params = [{transform_indices = @transform_0, window_bounds = array<i64: 2, 128>}, {transform_indices = @transform_1, window_bounds = array<i64: 2, 128>}, {transform_indices = @transform_2, window_bounds = array<i64: 1, 128>}]} {
    %c0_i32 = arith.constant 0 : i32
    %0 = arith.cmpi eq, %arg1, %c0_i32 : i32
    %1 = arith.extui %0 : i1 to i32
    %c0_i32_0 = arith.constant 0 : i32
    %2 = arith.cmpi ne, %1, %c0_i32_0 : i32
    scf.if %2 {
      %cst_11 = arith.constant 0.000000e+00 : f32
      %20 = vector.broadcast %cst_11 : f32 to vector<1x128xf32>
      %c0_12 = arith.constant 0 : index
      %c0_13 = arith.constant 0 : index
      %21 = vector.load %arg4[%c0_12, %c0_13] : memref<1x128xf32, #tpu.memory_space<vmem>>, vector<1x128xf32>
      tpu.vector_store %arg4[%c0_12, %c0_13], %20 {strides = array<i32>} : memref<1x128xf32, #tpu.memory_space<vmem>>, vector<1x128xf32>,
    } else {
    }
    %c0 = arith.constant 0 : index
    %c0_1 = arith.constant 0 : index
    %3 = vector.load %arg2[%c0, %c0_1] : memref<2x128xf32, #tpu.memory_space<vmem>>, vector<2x128xf32>
    %c0_2 = arith.constant 0 : index
    %c0_3 = arith.constant 0 : index
    %4 = vector.load %arg3[%c0_2, %c0_3] : memref<2x128xf32, #tpu.memory_space<vmem>>, vector<2x128xf32>
    %5 = arith.subf %3, %4 : vector<2x128xf32>
    %6 = math.absf %5 : vector<2x128xf32>
    %cst = arith.constant 1.000000e+00 : f32
    %7 = vector.broadcast %cst : f32 to vector<2x128xf32>
    %8 = arith.cmpf olt, %6, %7 : vector<2x128xf32>
    %cst_4 = arith.constant 5.000000e-01 : f32
    %9 = vector.broadcast %cst_4 : f32 to vector<2x128xf32>
    %10 = arith.mulf %9, %5 : vector<2x128xf32>
    %11 = arith.mulf %10, %5 : vector<2x128xf32>
    %cst_5 = arith.constant 5.000000e-01 : f32
    %12 = vector.broadcast %cst_5 : f32 to vector<2x128xf32>
    %13 = arith.subf %6, %12 : vector<2x128xf32>
    %14 = arith.select %8, %11, %13 : vector<2x128xi1>, vector<2x128xf32>
    %c0_6 = arith.constant 0 : index
    %c0_7 = arith.constant 0 : index
    %15 = vector.load %arg4[%c0_6, %c0_7] : memref<1x128xf32, #tpu.memory_space<vmem>>, vector<1x128xf32>
    %cst_8 = arith.constant dense<0.000000e+00> : vector<128xf32>
    %16 = vector.multi_reduction <add>, %14, %cst_8 [0] : vector<2x128xf32> to vector<128xf32>
    %17 = vector.shape_cast %16 : vector<128xf32> to vector<1x128xf32>
    %18 = arith.addf %15, %17 : vector<1x128xf32>
    %c0_9 = arith.constant 0 : index
    %c0_10 = arith.constant 0 : index
    %19 = vector.load %arg4[%c0_9, %c0_10] : memref<1x128xf32, #tpu.memory_space<vmem>>, vector<1x128xf32>
    tpu.vector_store %arg4[%c0_9, %c0_10], %18 {strides = array<i32>} : memref<1x128xf32, #tpu.memory_space<vmem>>, vector<1x128xf32>,
    return
  }
  func.func @transform_0(%arg0: i32, %arg1: i32) -> (i32, i32) {
    %c1_i32 = arith.constant 1 : i32
    %0 = arith.muli %arg0, %c1_i32 : i32
    %1 = arith.addi %0, %arg1 : i32
    %c0_i32 = arith.constant 0 : i32
    %c0_i32_0 = arith.constant 0 : i32
    return %1, %c0_i32 : i32, i32
  }
  func.func @transform_1(%arg0: i32, %arg1: i32) -> (i32, i32) {
    %c1_i32 = arith.constant 1 : i32
    %0 = arith.muli %arg0, %c1_i32 : i32
    %1 = arith.addi %0, %arg1 : i32
    %c0_i32 = arith.constant 0 : i32
    %c0_i32_0 = arith.constant 0 : i32
    return %1, %c0_i32 : i32, i32
  }
  func.func @transform_2(%arg0: i32, %arg1: i32) -> (i32, i32) {
    %c0_i32 = arith.constant 0 : i32
    %c0_i32_0 = arith.constant 0 : i32
    return %arg0, %c0_i32 : i32, i32
  }
}

</mosaic_0001>

<bundles_post_ra>
// kernel: highdemension_loss.1
= control target key start
LH: loop header
LB: loop body
LE: loop exit
PB: predicated region body
PF: predicated region fallthrough
CT: control target
= control target key end

     0   :  { %v88_v0 = vmov 0.0   ;;  %vm60_vm1 = vcmask 1041408   ;;  %s119_s2 = inlined_call_operand.vmem [shape: f32[1,128], index: 2, kind: output, shape index: {}]   ;;  %s120_s0 = inlined_call_operand.vmem [shape: f32[2,128], index: 0, kind: input, shape index: {}]   ;;  %s121_s1 = inlined_call_operand.vmem [shape: f32[2,128], index: 1, kind: input, shape index: {}]  }
   0x1   :  { %49 = vst [vmem:[%s119_s2] sm:$0x1] %v88_v0  ;;  %v50_v1 = vld [vmem:[%s120_s0] sm:$0x3] }
   0x2   :  { %v51_v2 = vld [vmem:[%s121_s1] sm:$0x3] }
   0x3   :  { %v52_v3 = vsub.f32 %v50_v1, %v51_v2 }
   0x5   :  { %v53_v4 = vand.u32 2147483647, %v52_v3  ;;  %v55_v5 = vmul.f32 0.5, %v52_v3 }
   0x7   :  { %vm54_vm0 = vcmp.lt.f32.partialorder %v53_v4, 1.0  ;;  %v56_v6 = vmul.f32 %v55_v5, %v52_v3  ;;  %v86_v7 = vadd.f32 -0.5, %v53_v4 }
   0x8   :  { %v59_v15 = vld [vmem:[%s119_s2] sm:$0x1] }
   0x9   :  { %v58_v8 = vsel %vm54_vm0, %v56_v6, %v86_v7 }
   0xa   :  { %v61_v9 = vsel %vm60_vm1, %v58_v8, 0.0 }
   0xb   :  { %v62_v10 = vrot.slane %v61_v9, 4 }
   0xd   :  { %v63_v11 = vadd.f32 %v62_v10, %v61_v9 }
   0xf   :  { %v64_v12 = vrot.slane %v63_v11, 2 }
  0x11   :  { %v65_v13 = vadd.f32 %v64_v12, %v63_v11 }
  0x13   :  { %v66_v14 = vrot.slane %v65_v13, 1 }
  0x15   :  { %v67_v16 = vadd.f32 %v66_v14, %v65_v13 }
  0x17   :  { %v68_v17 = vadd.f32 %v67_v16, %v59_v15 }
  0x19   :  { %69 = vst [vmem:[%s119_s2] sm:$0x1] %v68_v17 }

</bundles_post_ra>
